<compile_context>
chip_gen: v5e
topology: v5e:2x2
jax: 0.10.0
libtpu: 0.0.40
codegen_flags: <defaults>
</compile_context>

<pallas_src>
import math

import jax
import jax.numpy as jnp
from jax.experimental import pallas as pl
from jax.experimental.pallas import tpu as pltpu


# ----------------------------------------------------------------------------
# Helpers
# ----------------------------------------------------------------------------
def _gelu_tanh(x):
    # TODO(synk): PyTorch nn.GELU() defaults to the exact erf form; this tanh
    # approximation (== nn.GELU(approximate='tanh')) differs by < ~1e-3 and is
    # guaranteed to lower onto the TPU EUP (tanh slot).
    c = math.sqrt(2.0 / math.pi)
    return 0.5 * x * (1.0 + jnp.tanh(c * (x + 0.044715 * (x * x * x))))


def _round_up(v, m):
    return ((v + m - 1) // m) * m


def _pad2d(a, rows, cols):
    r, c = a.shape
    if r == rows and c == cols:
        return a
    return jnp.pad(a, ((0, rows - r), (0, cols - c)))


def _vmem_capacity_bytes():
    try:
        return int(pltpu.get_tpu_info().vmem_capacity_bytes)
    except Exception:
        return 64 * 1024 * 1024  # conservative fallback (v7x per-core VMEM)


def _tile_vmem_bytes(tm, th, ep, out_itemsize):
    """Approximate per-call VMEM use: double-buffered ins/outs + f32 acc scratch."""
    x_b = 2 * tm * ep * 2            # bf16 x tile (resident over h, still 2 bufs)
    w1_b = 2 * ep * th * 2           # bf16 W1 hidden slice
    w2_b = 2 * th * ep * 2           # bf16 W2 hidden slice
    bias = 2 * (th + ep) * 4         # f32 biases (negligible)
    out_b = 2 * tm * ep * out_itemsize
    acc_b = tm * ep * 4
    return x_b + w1_b + w2_b + bias + out_b + acc_b


# ----------------------------------------------------------------------------
# Fused MLP kernel: Linear1 + GELU + Linear2 (+ bias) in one pass.
# ----------------------------------------------------------------------------
def _mlp_kernel(x_ref, w1_ref, b1_ref, w2_ref, b2_ref, o_ref, acc_ref):
    h_idx = pl.program_id(1)

    @pl.when(h_idx == 0)
    def _init():
        acc_ref[...] = jnp.zeros_like(acc_ref)

    # Linear1 for this hidden slice: bf16 (tm, E) @ (E, th) on the MXU, f32 result.
    h = jnp.dot(x_ref[...], w1_ref[...], preferred_element_type=jnp.float32)
    h = h + b1_ref[...]            # f32 bias
    h = _gelu_tanh(h)              # f32 epilogue (VPU + EUP tanh) — safe on v5e

    # Linear2, accumulated over hidden slices: bf16 (tm, th) @ (th, E), f32 acc.
    acc_ref[...] += jnp.dot(h.astype(jnp.bfloat16), w2_ref[...],
                            preferred_element_type=jnp.float32)

    @pl.when(h_idx == pl.num_programs(1) - 1)
    def _finalize():
        # TODO(synk): nn.Dropout(p=0.4) is identity in eval mode; a training-mode
        # path would mask + 1/(1-p)-scale here via pltpu.prng_seed/prng_random_bits.
        o_ref[...] = (acc_ref[...] + b2_ref[...]).astype(o_ref.dtype)


def mlp_forward(x, params, *, tm_target=512, th_target=512):
    """x: (..., E) -> (..., E).  Fused Linear->GELU->Linear Pallas kernel."""
    w1, b1, w2, b2 = params["w1"], params["b1"], params["w2"], params["b2"]
    E = x.shape[-1]
    H = w1.shape[1]
    orig_shape = x.shape
    out_dtype = x.dtype
    out_itemsize = jnp.dtype(out_dtype).itemsize

    x2d = x.reshape(-1, E)
    M = x2d.shape[0]

    # --- Generation-aware tile / VMEM budgeting ------------------------------
    vmem_cap = _vmem_capacity_bytes()               # 128 MiB v5e/v6e, 64 MiB v7x
    vmem_limit = max(32 * 1024 * 1024,
                     min(int(0.75 * vmem_cap), 100 * 1024 * 1024))
    tile_budget = int(0.8 * vmem_limit)

    # Lane-align E/H to 128 (full MXU passes, unmasked output stores); align the
    # M tile to 128 MXU rows and pad M rather than shrinking tm below 128.
    Ep = _round_up(E, 128)
    tm = min(_round_up(tm_target, 128), _round_up(M, 128))
    th = min(_round_up(th_target, 128), _round_up(H, 128))
    while th > 128 and _tile_vmem_bytes(tm, th, Ep, out_itemsize) > tile_budget:
        th -= 128
    while tm > 128 and _tile_vmem_bytes(tm, th, Ep, out_itemsize) > tile_budget:
        tm -= 128

    Mp = _round_up(M, tm)
    Hp = _round_up(H, th)
    grid = (Mp // tm, Hp // th)
    # TODO(synk): for v7x megacore, small-M shapes leave grid[0] == 1 (one TC idle);
    # a core_map split of the H reduction across the 2 TCs would recover that.

    # --- Pad + cast operands (weights to bf16 once; biases stay f32) ---------
    # Zero padding is exact: padded x/W1 cols/rows contribute 0 to h,
    # GELU(0) == 0, and padded W2 rows/cols + padded b2 keep the extra output
    # columns at 0 before they are sliced away.
    x_p = _pad2d(x2d.astype(jnp.bfloat16), Mp, Ep)
    w1_p = _pad2d(w1.astype(jnp.bfloat16), Ep, Hp)
    w2_p = _pad2d(w2.astype(jnp.bfloat16), Hp, Ep)
    b1_p = _pad2d(b1.astype(jnp.float32).reshape(1, H), 1, Hp)
    b2_p = _pad2d(b2.astype(jnp.float32).reshape(1, E), 1, Ep)

    cost = pl.CostEstimate(
        flops=4 * Mp * Ep * Hp,                      # two matmuls, 2*M*E*H each
        transcendentals=Mp * Hp,                     # tanh in GELU
        bytes_accessed=(x_p.size * 2 + w1_p.size * 2 + w2_p.size * 2
                        + b1_p.size * 4 + b2_p.size * 4
                        + Mp * Ep * out_itemsize),
    )

    out_p = pl.pallas_call(
        _mlp_kernel,
        out_shape=jax.ShapeDtypeStruct((Mp, Ep), out_dtype),
        grid_spec=pltpu.PrefetchScalarGridSpec(
            num_scalar_prefetch=0,
            grid=grid,
            in_specs=[
                pl.BlockSpec((tm, Ep), lambda i, h: (i, 0)),   # x tile (resident over h)
                pl.BlockSpec((Ep, th), lambda i, h: (0, h)),   # W1 hidden slice
                pl.BlockSpec((1, th), lambda i, h: (0, h)),    # b1 hidden slice
                pl.BlockSpec((th, Ep), lambda i, h: (h, 0)),   # W2 hidden slice
                pl.BlockSpec((1, Ep), lambda i, h: (0, 0)),    # b2 (resident)
            ],
            out_specs=pl.BlockSpec((tm, Ep), lambda i, h: (i, 0)),
            scratch_shapes=[pltpu.VMEM((tm, Ep), jnp.float32)],
        ),
        compiler_params=pltpu.CompilerParams(
            dimension_semantics=("parallel", "arbitrary"),
            vmem_limit_bytes=vmem_limit,
        ),
        cost_estimate=cost,
    )(x_p, w1_p, b1_p, w2_p, b2_p)

    return out_p[:M, :E].reshape(orig_shape)


# ----------------------------------------------------------------------------
# Parameter init mirroring nn.Linear (weights stored as (in, out))
# ----------------------------------------------------------------------------
def init_params(key, embedding_dim, hidden_dim):
    E, H = embedding_dim, hidden_dim
    k1, k2, k3, k4 = jax.random.split(key, 4)
    b1_bound = 1.0 / math.sqrt(E)
    b2_bound = 1.0 / math.sqrt(H)
    return {
        "w1": jax.random.uniform(k1, (E, H), jnp.float32, -b1_bound, b1_bound),
        "b1": jax.random.uniform(k2, (H,), jnp.float32, -b1_bound, b1_bound),
        "w2": jax.random.uniform(k3, (H, E), jnp.float32, -b2_bound, b2_bound),
        "b2": jax.random.uniform(k4, (E,), jnp.float32, -b2_bound, b2_bound),
    }


def _reference(x, params):
    """Pure-JAX f32 reference of the same forward (eval-mode dropout = identity)."""
    E = x.shape[-1]
    x2d = x.reshape(-1, E)
    h = _gelu_tanh(x2d @ params["w1"] + params["b1"])
    y = h @ params["w2"] + params["b2"]
    return y.reshape(x.shape)


if __name__ == "__main__":
    B, T, E, H = 2, 8, 32, 128   # batch, seq, embedding_dim, hidden_dim
    key = jax.random.PRNGKey(0)
    kx, kp = jax.random.split(key)
    x = jax.random.normal(kx, (B, T, E), jnp.float32)
    params = init_params(kp, E, H)

    out = mlp_forward(x, params)
    jax.block_until_ready(out)

    assert out.shape == (B, T, E), out.shape
    assert bool(jnp.all(jnp.isfinite(out)))
    ref = _reference(x, params)
    # bf16 MXU operands (f32 accumulation) -> slightly looser tolerance vs f32 ref.
    assert bool(jnp.allclose(out, ref, atol=2e-2, rtol=2e-2)), \
        float(jnp.max(jnp.abs(out - ref)))
    print("KERNEL_OK")
</pallas_src>

<mosaic_0001>
module attributes {stable_mosaic.version = 11 : i64} {
  func.func @_mlp_kernel(%arg0: i32, %arg1: i32, %arg2: memref<128x128xbf16, #tpu.memory_space<vmem>>, %arg3: memref<128x128xbf16, #tpu.memory_space<vmem>>, %arg4: memref<1x128xf32, #tpu.memory_space<vmem>>, %arg5: memref<128x128xbf16, #tpu.memory_space<vmem>>, %arg6: memref<1x128xf32, #tpu.memory_space<vmem>>, %arg7: memref<128x128xf32, #tpu.memory_space<vmem>>, %arg8: memref<128x128xf32, #tpu.memory_space<vmem>>) attributes {dimension_semantics = [#tpu.dimension_semantics<parallel>, #tpu.dimension_semantics<arbitrary>], iteration_bounds = array<i64: 1, 1>, scalar_prefetch = 0 : i64, scratch_operands = 1 : i64, tpu.core_type = #tpu.core_type<tc>, window_params = [{transform_indices = @transform_0, window_bounds = array<i64: 128, 128>}, {transform_indices = @transform_1, window_bounds = array<i64: 128, 128>}, {transform_indices = @transform_2, window_bounds = array<i64: 1, 128>}, {transform_indices = @transform_3, window_bounds = array<i64: 128, 128>}, {pipeline_mode = #tpu.pipeline_mode<synchronous>, transform_indices = @transform_4, window_bounds = array<i64: 1, 128>}, {transform_indices = @transform_5, window_bounds = array<i64: 128, 128>}]} {
    %c0_i32 = arith.constant 0 : i32
    %0 = arith.cmpi eq, %arg1, %c0_i32 : i32
    %1 = arith.extui %0 : i1 to i32
    %c0_i32_0 = arith.constant 0 : i32
    %2 = arith.cmpi ne, %1, %c0_i32_0 : i32
    scf.if %2 {
      %cst_19 = arith.constant 0.000000e+00 : f32
      %31 = vector.broadcast %cst_19 : f32 to vector<128x128xf32>
      %c0_20 = arith.constant 0 : index
      %c0_21 = arith.constant 0 : index
      %32 = vector.load %arg8[%c0_20, %c0_21] : memref<128x128xf32, #tpu.memory_space<vmem>>, vector<128x128xf32>
      tpu.vector_store %arg8[%c0_20, %c0_21], %31 {strides = array<i32>} : memref<128x128xf32, #tpu.memory_space<vmem>>, vector<128x128xf32>,
    } else {
    }
    %c0 = arith.constant 0 : index
    %c0_1 = arith.constant 0 : index
    %3 = vector.load %arg2[%c0, %c0_1] : memref<128x128xbf16, #tpu.memory_space<vmem>>, vector<128x128xbf16>
    %c0_2 = arith.constant 0 : index
    %c0_3 = arith.constant 0 : index
    %4 = vector.load %arg3[%c0_2, %c0_3] : memref<128x128xbf16, #tpu.memory_space<vmem>>, vector<128x128xbf16>
    %cst = arith.constant dense<0.000000e+00> : vector<128x128xf32>
    %5 = tpu.matmul %3, %4, %cst {dimension_numbers = #tpu.dot_dimension_numbers<[1], [0], [0], [1], [0, 0, 1, 1], [], []>} : vector<128x128xbf16>, vector<128x128xbf16>, vector<128x128xf32> -> vector<128x128xf32>
    %c0_4 = arith.constant 0 : index
    %c0_5 = arith.constant 0 : index
    %6 = vector.load %arg4[%c0_4, %c0_5] : memref<1x128xf32, #tpu.memory_space<vmem>>, vector<1x128xf32>
    %7 = vector.broadcast %6 : vector<1x128xf32> to vector<128x128xf32>
    %8 = arith.addf %5, %7 : vector<128x128xf32>
    %cst_6 = arith.constant 5.000000e-01 : f32
    %9 = vector.broadcast %cst_6 : f32 to vector<128x128xf32>
    %10 = arith.mulf %9, %8 : vector<128x128xf32>
    %11 = arith.mulf %8, %8 : vector<128x128xf32>
    %12 = arith.mulf %11, %8 : vector<128x128xf32>
    %cst_7 = arith.constant 4.471500e-02 : f32
    %13 = vector.broadcast %cst_7 : f32 to vector<128x128xf32>
    %14 = arith.mulf %13, %12 : vector<128x128xf32>
    %15 = arith.addf %8, %14 : vector<128x128xf32>
    %cst_8 = arith.constant 0.797884583 : f32
    %16 = vector.broadcast %cst_8 : f32 to vector<128x128xf32>
    %17 = arith.mulf %16, %15 : vector<128x128xf32>
    %18 = math.tanh %17 : vector<128x128xf32>
    %cst_9 = arith.constant 1.000000e+00 : f32
    %19 = vector.broadcast %cst_9 : f32 to vector<128x128xf32>
    %20 = arith.addf %19, %18 : vector<128x128xf32>
    %21 = arith.mulf %10, %20 : vector<128x128xf32>
    %c0_10 = arith.constant 0 : index
    %c0_11 = arith.constant 0 : index
    %22 = vector.load %arg8[%c0_10, %c0_11] : memref<128x128xf32, #tpu.memory_space<vmem>>, vector<128x128xf32>
    %23 = arith.truncf %21 : vector<128x128xf32> to vector<128x128xbf16>
    %c0_12 = arith.constant 0 : index
    %c0_13 = arith.constant 0 : index
    %24 = vector.load %arg5[%c0_12, %c0_13] : memref<128x128xbf16, #tpu.memory_space<vmem>>, vector<128x128xbf16>
    %cst_14 = arith.constant dense<0.000000e+00> : vector<128x128xf32>
    %25 = tpu.matmul %23, %24, %cst_14 {dimension_numbers = #tpu.dot_dimension_numbers<[1], [0], [0], [1], [0, 0, 1, 1], [], []>} : vector<128x128xbf16>, vector<128x128xbf16>, vector<128x128xf32> -> vector<128x128xf32>
    %26 = arith.addf %22, %25 : vector<128x128xf32>
    %c0_15 = arith.constant 0 : index
    %c0_16 = arith.constant 0 : index
    %27 = vector.load %arg8[%c0_15, %c0_16] : memref<128x128xf32, #tpu.memory_space<vmem>>, vector<128x128xf32>
    tpu.vector_store %arg8[%c0_15, %c0_16], %26 {strides = array<i32>} : memref<128x128xf32, #tpu.memory_space<vmem>>, vector<128x128xf32>,
    %c0_i32_17 = arith.constant 0 : i32
    %28 = arith.cmpi eq, %arg1, %c0_i32_17 : i32
    %29 = arith.extui %28 : i1 to i32
    %c0_i32_18 = arith.constant 0 : i32
    %30 = arith.cmpi ne, %29, %c0_i32_18 : i32
    scf.if %30 {
      %c0_19 = arith.constant 0 : index
      %c0_20 = arith.constant 0 : index
      %31 = vector.load %arg8[%c0_19, %c0_20] : memref<128x128xf32, #tpu.memory_space<vmem>>, vector<128x128xf32>
      %c0_21 = arith.constant 0 : index
      %c0_22 = arith.constant 0 : index
      %32 = vector.load %arg6[%c0_21, %c0_22] : memref<1x128xf32, #tpu.memory_space<vmem>>, vector<1x128xf32>
      %33 = vector.broadcast %32 : vector<1x128xf32> to vector<128x128xf32>
      %34 = arith.addf %31, %33 : vector<128x128xf32>
      %c0_23 = arith.constant 0 : index
      %c0_24 = arith.constant 0 : index
      %35 = vector.load %arg7[%c0_23, %c0_24] : memref<128x128xf32, #tpu.memory_space<vmem>>, vector<128x128xf32>
      tpu.vector_store %arg7[%c0_23, %c0_24], %34 {strides = array<i32>} : memref<128x128xf32, #tpu.memory_space<vmem>>, vector<128x128xf32>,
    } else {
    }
    return
  }
  func.func @transform_0(%arg0: i32, %arg1: i32) -> (i32, i32) {
    %c0_i32 = arith.constant 0 : i32
    %c0_i32_0 = arith.constant 0 : i32
    return %arg0, %c0_i32 : i32, i32
  }
  func.func @transform_1(%arg0: i32, %arg1: i32) -> (i32, i32) {
    %c0_i32 = arith.constant 0 : i32
    %c0_i32_0 = arith.constant 0 : i32
    return %c0_i32, %arg1 : i32, i32
  }
  func.func @transform_2(%arg0: i32, %arg1: i32) -> (i32, i32) {
    %c0_i32 = arith.constant 0 : i32
    %c0_i32_0 = arith.constant 0 : i32
    return %c0_i32, %arg1 : i32, i32
  }
  func.func @transform_3(%arg0: i32, %arg1: i32) -> (i32, i32) {
    %c0_i32 = arith.constant 0 : i32
    %c0_i32_0 = arith.constant 0 : i32
    return %arg1, %c0_i32 : i32, i32
  }
  func.func @transform_4(%arg0: i32, %arg1: i32) -> (i32, i32) {
    %c0_i32 = arith.constant 0 : i32
    %c0_i32_0 = arith.constant 0 : i32
    %c0_i32_1 = arith.constant 0 : i32
    return %c0_i32, %c0_i32_0 : i32, i32
  }
  func.func @transform_5(%arg0: i32, %arg1: i32) -> (i32, i32) {
    %c0_i32 = arith.constant 0 : i32
    %c0_i32_0 = arith.constant 0 : i32
    return %arg0, %c0_i32 : i32, i32
  }
}

</mosaic_0001>

<bundles_post_ra>
// kernel: tpu_custom_call.1
= control target key start
LH: loop header
LB: loop body
LE: loop exit
PB: predicated region body
PF: predicated region fallthrough
CT: control target
= control target key end

     0   :  { %10 = vsyncpa [#allocation4], 0  ;;  %s1060_s0 = inlined_call_operand.hbm [shape: bf16[128,128], index: 0, kind: input, shape index: {}]   ;;  %s1061_s1 = inlined_call_operand.hbm [shape: bf16[128,128], index: 1, kind: input, shape index: {}]   ;;  %s1062_s2 = inlined_call_operand.vmem [shape: f32[1,128], index: 2, kind: input, shape index: {}]   ;;  %s1063_s3 = inlined_call_operand.hbm [shape: bf16[128,128], index: 3, kind: input, shape index: {}]   ;;  %s1064_s4 = inlined_call_operand.vmem [shape: f32[1,128], index: 4, kind: input, shape index: {}]   ;;  %s1065_s5 = inlined_call_operand.hbm [shape: f32[128,128], index: 5, kind: output, shape index: {}]  }
   0x1   :  { %11 = vsyncpa [#allocation7], 0 }
   0x2   :  { %12 = vsyncpa [#allocation5], 0  ;;  %s30_s20 = sshll.u32 %s1061_s1, 4  ;;  %s937_s21 = smov [#allocation6]   ;;  %s31_s20 = int_to_ptr.hbm [resolvable:$true] %s30_s20 }
   0x3   :  { %s32_s22 = sshll.u32 %s937_s21, 4  ;;  %s17_s25 = sshll.u32 %s1060_s0, 4  ;;  %s33_s22 = int_to_ptr.vmem [resolvable:$true] %s32_s22  ;;  %s18_s25 = int_to_ptr.hbm [resolvable:$true] %s17_s25 }
   0x4   :  { %s938_s26 = smov 64   ;;  %s939_s27 = smov 4  }
   0x5   :  { %38 = dma.hbm_to_vmem [thread:$0]  %s31_s20, 1024, %s33_s22, [#allocation7], %s938_s26, %s938_s26, %s939_s27  }
   0x6   :  { %s940_s28 = smov [#allocation3]   ;;  %s45_s7 = sshll.u32 %s1063_s3, 4  ;;  %s46_s7 = int_to_ptr.hbm [resolvable:$true] %s45_s7 }
   0x7   :  { %s19_s29 = sshll.u32 %s940_s28, 4  ;;  %s941_s1 = smov [#allocation8]   ;;  %s20_s29 = int_to_ptr.vmem [resolvable:$true] %s19_s29 }
   0x8   :  { %25 = dma.hbm_to_vmem [thread:$0]  %s18_s25, 1024, %s20_s29, [#allocation4], %s938_s26, %s938_s26, %s939_s27  }
   0x9   :  { %s47_s8 = sshll.u32 %s941_s1, 4  ;;  %s48_s8 = int_to_ptr.vmem [resolvable:$true] %s47_s8 }
   0xa   :  { %53 = dma.hbm_to_vmem [thread:$0]  %s46_s7, 1024, %s48_s8, [#allocation7], %s938_s26, %s938_s26, %s939_s27  }
   0xb   :  { %931 = dma.done.wait [#allocation4], 1024  }
   0xc   :  { %932 = vsyncadd [#allocation4], 4294966272 }
   0xd   :  { %933 = dma.done.wait [#allocation7], 2048  }
   0xe   :  { %934 = vsyncadd [#allocation7], 4294965248  ;;  %v768_v0 = vld [vmem:[#allocation6 + $0x38] sm:$0xff]  ;;  %v767_v1 = vld [vmem:[#allocation6 + $0x30] sm:$0xff]  ;;  %s643_s13 = sshll.u32 %s1065_s5, 4  ;;  %s943_s14 = smov 128   ;;  %s644_s13 = int_to_ptr.hbm [resolvable:$true] %s643_s13 }
   0xf   :  { %220 = vmatpush.bf16.msra.mxu0 %v768_v0  ;;  %777 = vmatpush.bf16.msra.mxu2 %v768_v0  ;;  %v766_v2 = vld [vmem:[#allocation6 + $0x28] sm:$0xff]  ;;  %v765_v3 = vld [vmem:[#allocation6 + $0x20] sm:$0xff]  ;;  %v764_v4 = vld [vmem:[#allocation6 + $0x18] sm:$0xff]  ;;  %s944_s15 = smov 8  }
  0x10   :  { %v763_v5 = vld [vmem:[#allocation6 + $0x10] sm:$0xff]  ;;  %v762_v6 = vld [vmem:[#allocation6 + $0x8] sm:$0xff]  ;;  %v761_v7 = vld [vmem:[#allocation6] sm:$0xff] }
  0x11   :  { %v753_v8 = vld [vmem:[#allocation3] sm:$0xff]  ;;  %v754_v10 = vld [vmem:[#allocation3 + $0x8] sm:$0xff]  ;;  %v755_v12 = vld [vmem:[#allocation3 + $0x10] sm:$0xff] }
  0x12   :  { %v757_v9 = vld [vmem:[#allocation3 + $0x20] sm:$0xff]  ;;  %v758_v11 = vld [vmem:[#allocation3 + $0x28] sm:$0xff]  ;;  %v759_v13 = vld [vmem:[#allocation3 + $0x30] sm:$0xff] }
  0x13   :  { %221 = vmatpush.bf16.msra.mxu0 %v767_v1  ;;  %778 = vmatpush.bf16.msra.mxu2 %v767_v1  ;;  %v756_v14 = vld [vmem:[#allocation3 + $0x18] sm:$0xff]  ;;  %v775_v17 = vld [vmem:[#allocation8 + $0x30] sm:$0xff]  ;;  %v774_v18 = vld [vmem:[#allocation8 + $0x28] sm:$0xff] }
  0x14   :  { %v760_v15 = vld [vmem:[#allocation3 + $0x38] sm:$0xff]  ;;  %v773_v19 = vld [vmem:[#allocation8 + $0x20] sm:$0xff]  ;;  %v771_v21 = vld [vmem:[#allocation8 + $0x10] sm:$0xff] }
  0x15   :  { %v776_v16 = vld [vmem:[#allocation8 + $0x38] sm:$0xff]  ;;  %v770_v22 = vld [vmem:[#allocation8 + $0x8] sm:$0xff]  ;;  %v987_v23 = vld [vmem:[%s1062_s2] ss:$0 sm:$0xff] }
  0x16   :  { %501 = vmatpush.bf16.msra.mxu1 %v776_v16  ;;  %785 = vmatpush.bf16.msra.mxu3 %v776_v16  ;;  %v772_v20 = vld [vmem:[#allocation8 + $0x18] sm:$0xff]  ;;  %v769_v24 = vld [vmem:[#allocation8] sm:$0xff] }
  0x17   :  { %222 = vmatpush.bf16.msra.mxu0 %v766_v2  ;;  %779 = vmatpush.bf16.msra.mxu2 %v766_v2 }
  0x1a   :  { %502 = vmatpush.bf16.msra.mxu1 %v775_v17  ;;  %786 = vmatpush.bf16.msra.mxu3 %v775_v17 }
  0x1b   :  { %223 = vmatpush.bf16.msra.mxu0 %v765_v3  ;;  %780 = vmatpush.bf16.msra.mxu2 %v765_v3 }
  0x1e   :  { %503 = vmatpush.bf16.msra.mxu1 %v774_v18  ;;  %787 = vmatpush.bf16.msra.mxu3 %v774_v18 }
  0x1f   :  { %224 = vmatpush.bf16.msra.mxu0 %v764_v4  ;;  %781 = vmatpush.bf16.msra.mxu2 %v764_v4 }
  0x22   :  { %504 = vmatpush.bf16.msra.mxu1 %v773_v19  ;;  %788 = vmatpush.bf16.msra.mxu3 %v773_v19 }
  0x23   :  { %225 = vmatpush.bf16.msra.mxu0 %v763_v5  ;;  %782 = vmatpush.bf16.msra.mxu2 %v763_v5 }
  0x26   :  { %505 = vmatpush.bf16.msra.mxu1 %v772_v20  ;;  %789 = vmatpush.bf16.msra.mxu3 %v772_v20 }
  0x27   :  { %226 = vmatpush.bf16.msra.mxu0 %v762_v6  ;;  %783 = vmatpush.bf16.msra.mxu2 %v762_v6 }
  0x2a   :  { %506 = vmatpush.bf16.msra.mxu1 %v771_v21  ;;  %790 = vmatpush.bf16.msra.mxu3 %v771_v21 }
  0x2b   :  { %227 = vmatpush.bf16.msra.mxu0 %v761_v7  ;;  %784 = vmatpush.bf16.msra.mxu2 %v761_v7 }
  0x2e   :  { %228 = vmatmul.bf16.vlgmr.msra.gmra.mxu0 %v753_v8  ;;  %248 = vmatmul.bf16.vlgmr.msra.gmra.mxu2 %v757_v9 }
  0x2f   :  { %507 = vmatpush.bf16.msra.mxu1 %v770_v22  ;;  %791 = vmatpush.bf16.msra.mxu3 %v770_v22 }
  0x33   :  { %508 = vmatpush.bf16.msra.mxu1 %v769_v24  ;;  %792 = vmatpush.bf16.msra.mxu3 %v769_v24 }
  0x3e   :  { %233 = vmatmul.bf16.gmra.mxu0 %v754_v10  ;;  %253 = vmatmul.bf16.gmra.mxu2 %v758_v11 }
  0x4e   :  { %238 = vmatmul.bf16.gmra.mxu0 %v755_v12  ;;  %258 = vmatmul.bf16.gmra.mxu2 %v759_v13 }
  0x5e   :  { %243 = vmatmul.bf16.gmra.mxu0 %v756_v14  ;;  %263 = vmatmul.bf16.gmra.mxu2 %v760_v15 }
  0xab   :  { %v229_v25 = vpop.f32.mrf.mxu0 }
  0xac   :  { %v230_v26 = vadd.f32 %v987_v23, %v229_v25 }
  0xae   :  { %v285_v27 = vmul.f32 %v230_v26, %v230_v26  ;;  %v269_v5 = vmul.f32 0.5, %v230_v26 }
  0xb0   :  { %v301_v28 = vmul.f32 %v285_v27, %v230_v26 }
  0xb1   :  { %v249_v29 = vpop.f32.mrf.mxu2 }
  0xb2   :  { %v317_v30 = vmul.f32 0.044715, %v301_v28  ;;  %v991_v31 = vadd.f32 %v987_v23, %v249_v29 }
  0xb3   :  { %v231_v32 = vpop.f32.mrf.mxu0 }
  0xb4   :  { %v293_v33 = vmul.f32 %v991_v31, %v991_v31  ;;  %v232_v34 = vadd.f32 %v987_v23, %v231_v32  ;;  %v333_v35 = vadd.f32 %v317_v30, %v230_v26  ;;  %v277_v26 = vmul.f32 0.5, %v991_v31 }
  0xb6   :  { %v309_v36 = vmul.f32 %v293_v33, %v991_v31  ;;  %v286_v37 = vmul.f32 %v232_v34, %v232_v34  ;;  %v349_v40 = vmul.f32 0.7978846, %v333_v35  ;;  %v270_v6 = vmul.f32 0.5, %v232_v34 }
  0xb8   :  { %v325_v38 = vmul.f32 0.044715, %v309_v36  ;;  %v302_v39 = vmul.f32 %v286_v37, %v232_v34  ;;  %803 = vtanh.f32 %v349_v40 }
  0xb9   :  { %v251_v41 = vpop.f32.mrf.mxu2 }
  0xba   :  { %v318_v42 = vmul.f32 0.044715, %v302_v39  ;;  %v252_v43 = vadd.f32 %v987_v23, %v251_v41  ;;  %v341_v44 = vadd.f32 %v325_v38, %v991_v31 }
  0xbb   :  { %v234_v45 = vpop.f32.mrf.mxu0 }
  0xbc   :  { %v294_v46 = vmul.f32 %v252_v43, %v252_v43  ;;  %v1000_v47 = vadd.f32 %v987_v23, %v234_v45  ;;  %v334_v48 = vadd.f32 %v318_v42, %v232_v34  ;;  %v357_v52 = vmul.f32 0.7978846, %v341_v44 }
  0xbd   :  { %v278_v27 = vmul.f32 0.5, %v252_v43 }
  0xbe   :  { %v310_v49 = vmul.f32 %v294_v46, %v252_v43  ;;  %v287_v50 = vmul.f32 %v1000_v47, %v1000_v47  ;;  %v350_v51 = vmul.f32 0.7978846, %v334_v48  ;;  %v804_v56 = vpop.eup %803 }
  0xbf   :  { %v381_v1 = vadd.f32 1.0, %v804_v56 }
  0xc0   :  { %v326_v53 = vmul.f32 0.044715, %v310_v49  ;;  %v303_v54 = vmul.f32 %v287_v50, %v1000_v47  ;;  %805 = vtanh.f32 %v350_v51 }
  0xc1   :  { %v254_v55 = vpop.f32.mrf.mxu2  ;;  %807 = vtanh.f32 %v357_v52  ;;  %v397_v13 = vmul.f32 %v381_v1, %v269_v5 }
  0xc2   :  { %v319_v57 = vmul.f32 0.044715, %v303_v54  ;;  %v1006_v58 = vadd.f32 %v987_v23, %v254_v55  ;;  %v342_v59 = vadd.f32 %v326_v53, %v252_v43  ;;  %v271_v53 = vmul.f32 0.5, %v1000_v47 }
  0xc3   :  { %v236_v60 = vpop.f32.mrf.mxu0 }
  0xc4   :  { %v295_v61 = vmul.f32 %v1006_v58, %v1006_v58  ;;  %v237_v62 = vadd.f32 %v987_v23, %v236_v60  ;;  %v358_v63 = vmul.f32 0.7978846, %v342_v59  ;;  %v335_v0 = vadd.f32 %v319_v57, %v1000_v47 }
  0xc6   :  { %v806_v2 = vpop.eup %805  ;;  %v311_v3 = vmul.f32 %v295_v61, %v1006_v58  ;;  %v288_v4 = vmul.f32 %v237_v62, %v237_v62  ;;  %809 = vtanh.f32 %v358_v63  ;;  %v351_v11 = vmul.f32 0.7978846, %v335_v0 }
  0xc7   :  { %v382_v7 = vadd.f32 1.0, %v806_v2  ;;  %v808_v8 = vpop.eup %807  ;;  %v272_v54 = vmul.f32 0.5, %v237_v62 }
  0xc8   :  { %v327_v9 = vmul.f32 0.044715, %v311_v3  ;;  %v304_v10 = vmul.f32 %v288_v4, %v237_v62  ;;  %v389_v20 = vadd.f32 1.0, %v808_v8  ;;  %811 = vtanh.f32 %v351_v11 }
  0xc9   :  { %v256_v12 = vpop.f32.mrf.mxu2  ;;  %v398_v14 = vmul.f32 %v382_v7, %v270_v6 }
  0xca   :  { %v320_v15 = vmul.f32 0.044715, %v304_v10  ;;  %v1014_v16 = vadd.f32 %v987_v23, %v256_v12  ;;  %v343_v17 = vadd.f32 %v327_v9, %v1006_v58  ;;  %v405_v34 = vmul.f32 %v389_v20, %v277_v26 }
  0xcb   :  { %v239_v18 = vpop.f32.mrf.mxu0  ;;  %v429_v19 = vpack.c.bf16 %v398_v14, %v397_v13  ;;  %v279_v9 = vmul.f32 0.5, %v1006_v58 }
  0xcc   :  { %v810_v21 = vpop.eup %809  ;;  %v296_v22 = vmul.f32 %v1014_v16, %v1014_v16  ;;  %v1020_v24 = vadd.f32 %v987_v23, %v239_v18  ;;  %v336_v25 = vadd.f32 %v320_v15, %v237_v62  ;;  %v359_v33 = vmul.f32 0.7978846, %v343_v17 }
  0xcd   :  { %509 = vmatmul.bf16.vlgmr.msra.gmra.mxu1 %v429_v19  ;;  %v390_v28 = vadd.f32 1.0, %v810_v21  ;;  %v280_v10 = vmul.f32 0.5, %v1014_v16 }
  0xce   :  { %v312_v29 = vmul.f32 %v296_v22, %v1014_v16  ;;  %v289_v30 = vmul.f32 %v1020_v24, %v1020_v24  ;;  %v352_v32 = vmul.f32 0.7978846, %v336_v25  ;;  %v812_v40 = vpop.eup %811 }
  0xcf   :  { %v406_v35 = vmul.f32 %v390_v28, %v278_v27  ;;  %v383_v49 = vadd.f32 1.0, %v812_v40 }
  0xd0   :  { %v328_v36 = vmul.f32 0.044715, %v312_v29  ;;  %v305_v37 = vmul.f32 %v289_v30, %v1020_v24  ;;  %813 = vtanh.f32 %v352_v32 }
  0xd1   :  { %v259_v38 = vpop.f32.mrf.mxu2  ;;  %v433_v39 = vpack.c.bf16 %v406_v35, %v405_v34  ;;  %815 = vtanh.f32 %v359_v33  ;;  %v399_v63 = vmul.f32 %v383_v49, %v271_v53 }
  0xd2   :  { %v321_v41 = vmul.f32 0.044715, %v305_v37  ;;  %v1028_v31 = vadd.f32 %v987_v23, %v259_v38  ;;  %v344_v42 = vadd.f32 %v328_v36, %v1014_v16  ;;  %v273_v37 = vmul.f32 0.5, %v1020_v24 }
  0xd3   :  { %v241_v43 = vpop.f32.mrf.mxu0  ;;  %529 = vmatmul.bf16.vlgmr.msra.gmra.mxu3 %v433_v39 }
  0xd4   :  { %v297_v44 = vmul.f32 %v1028_v31, %v1028_v31  ;;  %v242_v45 = vadd.f32 %v987_v23, %v241_v43  ;;  %v360_v46 = vmul.f32 0.7978846, %v344_v42  ;;  %v337_v48 = vadd.f32 %v321_v41, %v1020_v24 }
  0xd5   :  { %v281_v24 = vmul.f32 0.5, %v1028_v31 }
  0xd6   :  { %v814_v50 = vpop.eup %813  ;;  %v313_v51 = vmul.f32 %v297_v44, %v1028_v31  ;;  %v290_v52 = vmul.f32 %v242_v45, %v242_v45  ;;  %817 = vtanh.f32 %v360_v46  ;;  %v353_v60 = vmul.f32 0.7978846, %v337_v48 }
  0xd7   :  { %v384_v55 = vadd.f32 1.0, %v814_v50  ;;  %v816_v56 = vpop.eup %815  ;;  %v274_v38 = vmul.f32 0.5, %v242_v45 }
  0xd8   :  { %v329_v57 = vmul.f32 0.044715, %v313_v51  ;;  %v306_v59 = vmul.f32 %v290_v52, %v242_v45  ;;  %v391_v6 = vadd.f32 1.0, %v816_v56  ;;  %819 = vtanh.f32 %v353_v60 }
  0xd9   :  { %v261_v61 = vpop.f32.mrf.mxu2  ;;  %v400_v0 = vmul.f32 %v384_v55, %v272_v54 }
  0xda   :  { %v322_v1 = vmul.f32 0.044715, %v306_v59  ;;  %v262_v2 = vadd.f32 %v987_v23, %v261_v61  ;;  %v345_v3 = vadd.f32 %v329_v57, %v1028_v31  ;;  %v407_v17 = vmul.f32 %v391_v6, %v279_v9 }
  0xdb   :  { %v244_v4 = vpop.f32.mrf.mxu0  ;;  %v430_v5 = vpack.c.bf16 %v400_v0, %v399_v63 }
  0xdc   :  { %v818_v7 = vpop.eup %817  ;;  %v298_v8 = vmul.f32 %v262_v2, %v262_v2  ;;  %v1040_v47 = vadd.f32 %v987_v23, %v244_v4  ;;  %v338_v62 = vadd.f32 %v322_v1, %v242_v45  ;;  %v361_v15 = vmul.f32 0.7978846, %v345_v3 }
  0xdd   :  { %514 = vmatmul.bf16.gmra.mxu1 %v430_v5  ;;  %v392_v11 = vadd.f32 1.0, %v818_v7  ;;  %v282_v45 = vmul.f32 0.5, %v262_v2 }
  0xde   :  { %v314_v12 = vmul.f32 %v298_v8, %v262_v2  ;;  %v291_v13 = vmul.f32 %v1040_v47, %v1040_v47  ;;  %v354_v14 = vmul.f32 0.7978846, %v338_v62  ;;  %v820_v25 = vpop.eup %819  ;;  %v275_v31 = vmul.f32 0.5, %v1040_v47 }
  0xdf   :  { %v408_v18 = vmul.f32 %v392_v11, %v280_v10  ;;  %v385_v33 = vadd.f32 1.0, %v820_v25 }
  0xe0   :  { %v330_v19 = vmul.f32 0.044715, %v314_v12  ;;  %v307_v20 = vmul.f32 %v291_v13, %v1040_v47  ;;  %821 = vtanh.f32 %v354_v14 }
  0xe1   :  { %v264_v21 = vpop.f32.mrf.mxu2  ;;  %v434_v22 = vpack.c.bf16 %v408_v18, %v407_v17  ;;  %823 = vtanh.f32 %v361_v15  ;;  %v401_v46 = vmul.f32 %v385_v33, %v273_v37 }
  0xe2   :  { %v323_v26 = vmul.f32 0.044715, %v307_v20  ;;  %v265_v58 = vadd.f32 %v987_v23, %v264_v21  ;;  %v346_v16 = vadd.f32 %v330_v19, %v262_v2 }
  0xe3   :  { %v246_v27 = vpop.f32.mrf.mxu0  ;;  %534 = vmatmul.bf16.gmra.mxu3 %v434_v22 }
  0xe4   :  { %v299_v28 = vmul.f32 %v265_v58, %v265_v58  ;;  %v247_v29 = vadd.f32 %v987_v23, %v246_v27  ;;  %v362_v30 = vmul.f32 0.7978846, %v346_v16  ;;  %v339_v32 = vadd.f32 %v323_v26, %v1040_v47  ;;  %v802_v47 = vld [vmem:[%s1064_s4] ss:$0 sm:$0xff]  ;;  %s942_s4 = smov [#allocation9]  }
  0xe5   :  { %v283_v14 = vmul.f32 0.5, %v265_v58  ;;  %s641_s10 = sshll.u32 %s942_s4, 4  ;;  %s642_s10 = int_to_ptr.vmem [resolvable:$true] %s641_s10 }
  0xe6   :  { %v822_v34 = vpop.eup %821  ;;  %v315_v35 = vmul.f32 %v299_v28, %v265_v58  ;;  %v292_v36 = vmul.f32 %v247_v29, %v247_v29  ;;  %825 = vtanh.f32 %v362_v30  ;;  %v355_v43 = vmul.f32 0.7978846, %v339_v32 }
  0xe7   :  { %v386_v39 = vadd.f32 1.0, %v822_v34  ;;  %v824_v40 = vpop.eup %823  ;;  %v276_v2 = vmul.f32 0.5, %v247_v29 }
  0xe8   :  { %v331_v41 = vmul.f32 0.044715, %v315_v35  ;;  %v308_v42 = vmul.f32 %v292_v36, %v247_v29  ;;  %v393_v53 = vadd.f32 1.0, %v824_v40  ;;  %827 = vtanh.f32 %v355_v43 }
  0xe9   :  { %v266_v44 = vpop.f32.mrf.mxu2  ;;  %v402_v48 = vmul.f32 %v386_v39, %v274_v38 }
  0xea   :  { %v324_v49 = vmul.f32 0.044715, %v308_v42  ;;  %v267_v50 = vadd.f32 %v987_v23, %v266_v44  ;;  %v347_v51 = vadd.f32 %v331_v41, %v265_v58  ;;  %v409_v63 = vmul.f32 %v393_v53, %v281_v24 }
  0xeb   :  { %v431_v52 = vpack.c.bf16 %v402_v48, %v401_v46 }
  0xec   :  { %v826_v54 = vpop.eup %825  ;;  %v300_v55 = vmul.f32 %v267_v50, %v267_v50  ;;  %v340_v56 = vadd.f32 %v324_v49, %v247_v29  ;;  %v363_v61 = vmul.f32 0.7978846, %v347_v51  ;;  %v284_v15 = vmul.f32 0.5, %v267_v50 }
  0xed   :  { %519 = vmatmul.bf16.gmra.mxu1 %v431_v52  ;;  %v394_v57 = vadd.f32 1.0, %v826_v54 }
  0xee   :  { %v316_v59 = vmul.f32 %v300_v55, %v267_v50  ;;  %v356_v60 = vmul.f32 0.7978846, %v340_v56  ;;  %v828_v3 = vpop.eup %827 }
  0xef   :  { %v410_v0 = vmul.f32 %v394_v57, %v282_v45  ;;  %v387_v6 = vadd.f32 1.0, %v828_v3 }
  0xf0   :  { %v332_v1 = vmul.f32 0.044715, %v316_v59  ;;  %829 = vtanh.f32 %v356_v60 }
  0xf1   :  { %v435_v23 = vpack.c.bf16 %v410_v0, %v409_v63  ;;  %831 = vtanh.f32 %v363_v61  ;;  %v403_v9 = vmul.f32 %v387_v6, %v275_v31 }
  0xf2   :  { %v348_v4 = vadd.f32 %v332_v1, %v267_v50 }
  0xf3   :  { %539 = vmatmul.bf16.gmra.mxu3 %v435_v23 }
  0xf4   :  { %v364_v5 = vmul.f32 0.7978846, %v348_v4 }
  0xf6   :  { %v830_v7 = vpop.eup %829  ;;  %833 = vtanh.f32 %v364_v5 }
  0xf7   :  { %v388_v8 = vadd.f32 1.0, %v830_v7  ;;  %v832_v62 = vpop.eup %831 }
  0xf8   :  { %v395_v12 = vadd.f32 1.0, %v832_v62 }
  0xf9   :  { %v404_v10 = vmul.f32 %v388_v8, %v276_v2 }
  0xfa   :  { %v411_v18 = vmul.f32 %v395_v12, %v283_v14 }
  0xfb   :  { %v432_v11 = vpack.c.bf16 %v404_v10, %v403_v9 }
  0xfc   :  { %v834_v13 = vpop.eup %833 }
  0xfd   :  { %524 = vmatmul.bf16.gmra.mxu1 %v432_v11  ;;  %v396_v17 = vadd.f32 1.0, %v834_v13 }
  0xff   :  { %v412_v19 = vmul.f32 %v396_v17, %v284_v15 }
 0x101   :  { %v436_v20 = vpack.c.bf16 %v412_v19, %v411_v18 }
 0x103   :  { %544 = vmatmul.bf16.gmra.mxu3 %v436_v20 }
 0x14a   :  { %v510_v21 = vpop.f32.mrf.mxu1 }
 0x14b   :  { %v605_v22 = vadd.f32 %v802_v47, %v510_v21 }
 0x14d   :  { %621 = vst [vmem:[#allocation9] sm:$0xff] %v605_v22 }
 0x152   :  { %v512_v25 = vpop.f32.mrf.mxu1 }
 0x153   :  { %v606_v26 = vadd.f32 %v802_v47, %v512_v25 }
 0x155   :  { %622 = vst [vmem:[#allocation9 + $0x8] sm:$0xff] %v606_v26 }
 0x156   :  { %v530_v16 = vpop.f32.mrf.mxu3 }
 0x157   :  { %v613_v27 = vadd.f32 %v802_v47, %v530_v16 }
 0x159   :  { %629 = vst [vmem:[#allocation9 + $0x40] sm:$0xff] %v613_v27 }
 0x15a   :  { %v515_v58 = vpop.f32.mrf.mxu1 }
 0x15b   :  { %v607_v28 = vadd.f32 %v802_v47, %v515_v58 }
 0x15d   :  { %623 = vst [vmem:[#allocation9 + $0x10] sm:$0xff] %v607_v28 }
 0x15e   :  { %v532_v29 = vpop.f32.mrf.mxu3 }
 0x15f   :  { %v614_v30 = vadd.f32 %v802_v47, %v532_v29 }
 0x161   :  { %630 = vst [vmem:[#allocation9 + $0x48] sm:$0xff] %v614_v30 }
 0x162   :  { %v517_v32 = vpop.f32.mrf.mxu1 }
 0x163   :  { %v608_v33 = vadd.f32 %v802_v47, %v517_v32 }
 0x165   :  { %624 = vst [vmem:[#allocation9 + $0x18] sm:$0xff] %v608_v33 }
 0x166   :  { %v535_v34 = vpop.f32.mrf.mxu3 }
 0x167   :  { %v615_v35 = vadd.f32 %v802_v47, %v535_v34 }
 0x169   :  { %631 = vst [vmem:[#allocation9 + $0x50] sm:$0xff] %v615_v35 }
 0x16a   :  { %v520_v36 = vpop.f32.mrf.mxu1 }
 0x16b   :  { %v609_v37 = vadd.f32 %v802_v47, %v520_v36 }
 0x16d   :  { %625 = vst [vmem:[#allocation9 + $0x20] sm:$0xff] %v609_v37 }
 0x16e   :  { %v537_v38 = vpop.f32.mrf.mxu3 }
 0x16f   :  { %v616_v39 = vadd.f32 %v802_v47, %v537_v38 }
 0x171   :  { %632 = vst [vmem:[#allocation9 + $0x58] sm:$0xff] %v616_v39 }
 0x172   :  { %v522_v40 = vpop.f32.mrf.mxu1 }
 0x173   :  { %v610_v41 = vadd.f32 %v802_v47, %v522_v40 }
 0x175   :  { %626 = vst [vmem:[#allocation9 + $0x28] sm:$0xff] %v610_v41 }
 0x176   :  { %v540_v42 = vpop.f32.mrf.mxu3 }
 0x177   :  { %v617_v43 = vadd.f32 %v802_v47, %v540_v42 }
 0x179   :  { %633 = vst [vmem:[#allocation9 + $0x60] sm:$0xff] %v617_v43 }
 0x17a   :  { %v525_v44 = vpop.f32.mrf.mxu1 }
 0x17b   :  { %v611_v46 = vadd.f32 %v802_v47, %v525_v44 }
 0x17d   :  { %627 = vst [vmem:[#allocation9 + $0x30] sm:$0xff] %v611_v46 }
 0x17e   :  { %v542_v48 = vpop.f32.mrf.mxu3 }
 0x17f   :  { %v618_v49 = vadd.f32 %v802_v47, %v542_v48 }
 0x181   :  { %634 = vst [vmem:[#allocation9 + $0x68] sm:$0xff] %v618_v49 }
 0x182   :  { %v527_v50 = vpop.f32.mrf.mxu1 }
 0x183   :  { %v612_v51 = vadd.f32 %v802_v47, %v527_v50 }
 0x185   :  { %628 = vst [vmem:[#allocation9 + $0x38] sm:$0xff] %v612_v51 }
 0x186   :  { %v545_v52 = vpop.f32.mrf.mxu3 }
 0x187   :  { %v619_v53 = vadd.f32 %v802_v47, %v545_v52 }
 0x189   :  { %635 = vst [vmem:[#allocation9 + $0x70] sm:$0xff] %v619_v53 }
 0x18e   :  { %v547_v54 = vpop.f32.mrf.mxu3 }
 0x18f   :  { %v620_v55 = vadd.f32 %v802_v47, %v547_v54 }
 0x191   :  { %636 = vst [vmem:[#allocation9 + $0x78] sm:$0xff] %v620_v55 }
 0x192   :  { %649 = dma.vmem_to_hbm [thread:$0]  %s642_s10, 2048, %s644_s13, [#allocation5], %s943_s14, %s943_s14, %s944_s15  }
 0x193   :  { %935 = dma.done.wait [#allocation5], 2048  }
 0x194   :  { %936 = vsyncadd [#allocation5], 4294965248 }
 0x195   :  { %654 = vsyncpa [#allocation4], 1 }
 0x196   :  { %655 = vsyncpa [#allocation7], 1 }
 0x197   :  { %656 = vsyncpa [#allocation5], 1 }

</bundles_post_ra>
